<compile_context>
chip_gen: v6e
topology: v6e:2x2x1
jax: 0.10.0
libtpu: 0.0.40
codegen_flags: <defaults>
</compile_context>

<pallas_src>
import jax
import jax.numpy as jnp
from jax.experimental import pallas as pl
from jax.experimental.pallas import tpu as pltpu


# -----------------------------------------------------------------------------
# Kernels
# -----------------------------------------------------------------------------
# grid = (cdiv(M, tm), N_pad // tn, K // tk); K is the reduction axis (last,
# "arbitrary"). Weight is already (K, N_pad) so the MXU contraction is the
# canonical x(m,k) @ w(k,n) with no per-tile transpose.

def _matmul_kernel(x_ref, w_ref, o_ref, acc_ref):
    k = pl.program_id(2)
    prod = jnp.dot(x_ref[...], w_ref[...], preferred_element_type=jnp.float32)

    @pl.when(k == 0)
    def _():
        acc_ref[...] = prod            # direct write: no zero-fill + reload

    @pl.when(k > 0)
    def _():
        acc_ref[...] += prod

    @pl.when(k == pl.num_programs(2) - 1)
    def _():
        o_ref[...] = acc_ref[...].astype(o_ref.dtype)


def _matmul_bias_kernel(x_ref, w_ref, b_ref, o_ref, acc_ref):
    k = pl.program_id(2)
    prod = jnp.dot(x_ref[...], w_ref[...], preferred_element_type=jnp.float32)

    @pl.when(k == 0)
    def _():
        acc_ref[...] = prod

    @pl.when(k > 0)
    def _():
        acc_ref[...] += prod

    @pl.when(k == pl.num_programs(2) - 1)
    def _():
        o_ref[...] = (acc_ref[...] + b_ref[...].astype(jnp.float32)).astype(o_ref.dtype)


# -----------------------------------------------------------------------------
# Hardware queries & tile selection
# -----------------------------------------------------------------------------
def _round_up(x: int, m: int) -> int:
    return ((x + m - 1) // m) * m


def _vmem_capacity_bytes() -> int:
    try:
        return int(pltpu.get_tpu_info().vmem_capacity_bytes)
    except Exception:
        return 64 << 20        # conservative fallback (v7x per-TC)


def _num_tensorcores() -> int:
    """Best-effort TensorCore count; conservative default 1 (no grid split)."""
    try:
        info = pltpu.get_tpu_info()
        for attr in ("num_cores", "core_count", "num_tensorcores",
                     "tensorcore_count", "num_cores_per_chip"):
            v = getattr(info, attr, None)
            if isinstance(v, int) and v > 0:
                return v
    except Exception:
        pass
    return 1


def _legal_tile(dim: int, target: int) -> int:
    """Largest lane-aligned tile <= target that divides `dim`, else full extent.

    Prefers 256-alignment (full 256x256 MXU tile on v6e/v7x), falls back to 128.
    A full-extent fallback is still a legal BlockSpec dim; _choose_tiles re-checks
    its footprint and shrinks the other tile dims if needed.
    """
    if dim <= target:
        return dim
    for align in (256, 128):
        t = (target // align) * align
        while t >= align:
            if dim % t == 0:
                return t
            t -= align
    return dim


def _vmem_footprint(tm, tn, tk, in_bytes, out_bytes):
    # double-buffered x & w input tiles + f32 accumulator + double-buffered out + bias
    return (2 * (tm * tk + tk * tn) * in_bytes
            + tm * tn * 4
            + 2 * tm * tn * out_bytes
            + 2 * tn * in_bytes)


def _choose_tiles(M, N, K, in_bytes, out_bytes, vmem_budget, m_granule):
    """Pick (tm, tn, tk) whose double-buffered footprint fits `vmem_budget`."""
    if vmem_budget >= (48 << 20):            # v5e / v6e (128 MiB VMEM)
        tm_t, tn_t, tk_t = 512, 2048, 2048
    else:                                     # v7x (64 MiB / TC) or unknown
        tm_t, tn_t, tk_t = 512, 1024, 1024
    while True:
        tn = _legal_tile(N, tn_t)
        tk = _legal_tile(K, tk_t)
        tm = M if M <= tm_t else tm_t
        if _vmem_footprint(tm, tn, tk, in_bytes, out_bytes) <= vmem_budget:
            return tm, tn, tk
        if tk_t > 128:
            tk_t //= 2
        elif tn_t > 128:
            tn_t //= 2
        elif tm_t > m_granule:
            tm_t = max(m_granule, tm_t // 2)
        else:
            return tm, tn, tk     # smallest legal config; vmem_limit may still catch it


# -----------------------------------------------------------------------------
# Matmul driver
# -----------------------------------------------------------------------------
def _cpl_matmul(x, w_kn, b_row, n_out, tm=None, tn=None, tk=None):
    """Computes (x @ w_kn (+ b_row))[..., :n_out] with w_kn already (K, N_pad)."""
    orig_shape = x.shape
    K = orig_shape[-1]
    Kw, Np = w_kn.shape
    assert Kw == K, f"weight K={Kw} incompatible with input dim {K}"
    assert Np % 128 == 0

    x2d = x.reshape(-1, K)
    M = x2d.shape[0]

    in_bytes = jnp.dtype(x.dtype).itemsize
    out_bytes = in_bytes
    m_granule = {4: 8, 2: 16, 1: 32}.get(in_bytes, 8)

    vmem_cap = _vmem_capacity_bytes()
    vmem_budget = int(vmem_cap * 0.45)               # headroom for Mosaic internals
    vmem_limit = min(int(vmem_cap * 3 // 4), 100 << 20)

    auto = tm is None and tn is None and tk is None
    atm, atn, atk = _choose_tiles(M, Np, K, in_bytes, out_bytes, vmem_budget, m_granule)
    tm = tm or atm
    tn = tn or atn
    tk = tk or atk

    assert Np % tn == 0, f"tn={tn} must divide padded N={Np}"
    assert K % tk == 0, f"tk={tk} must divide K={K}"
    assert tm % 8 == 0 or tm == M, f"tm={tm} must be a multiple of 8 or equal M={M}"

    gm, gn, gk = pl.cdiv(M, tm), Np // tn, K // tk

    # 2-TensorCore chips (v7x): guarantee >= 2 tiles on the parallel grid axes.
    # Gated on detected core count so single-TC chips don't pay an extra grid step.
    if auto and _num_tensorcores() >= 2 and gm * gn < 2:
        if tn % 256 == 0:
            tn //= 2                    # stays a lane-dense 128-multiple
        elif tm % 16 == 0:
            tm //= 2
        gm, gn = pl.cdiv(M, tm), Np // tn

    x_spec = pl.BlockSpec((tm, tk), lambda i, j, k: (i, k))
    out_spec = pl.BlockSpec((tm, tn), lambda i, j, k: (i, j))

    # Deeper weight pipeline for decode-ish shapes (weight-bandwidth bound, esp. v5e).
    foot = _vmem_footprint(tm, tn, tk, in_bytes, out_bytes)
    if auto and M <= 64 and gk >= 3 and foot + tk * tn * in_bytes <= vmem_budget:
        w_spec = pl.BlockSpec((tk, tn), lambda i, j, k: (k, j),
                              pipeline_mode=pl.Buffered(3))
    else:
        w_spec = pl.BlockSpec((tk, tn), lambda i, j, k: (k, j))

    if b_row is not None:
        kernel = _matmul_bias_kernel
        in_specs = [x_spec, w_spec, pl.BlockSpec((1, tn), lambda i, j, k: (0, j))]
        args = (x2d, w_kn, b_row)
    else:
        kernel = _matmul_kernel
        in_specs = [x_spec, w_spec]
        args = (x2d, w_kn)

    bytes_accessed = (M * K * in_bytes * gn          # x re-read per output-col tile
                      + K * Np * in_bytes * gm       # w re-read per output-row tile
                      + M * Np * out_bytes
                      + (Np * in_bytes if b_row is not None else 0))
    cost = pl.CostEstimate(flops=2 * M * Np * K, transcendentals=0,
                           bytes_accessed=int(bytes_accessed))

    out2d = pl.pallas_call(
        kernel,
        out_shape=jax.ShapeDtypeStruct((M, Np), x.dtype),
        grid_spec=pltpu.PrefetchScalarGridSpec(
            num_scalar_prefetch=0,
            grid=(gm, gn, gk),
            in_specs=in_specs,
            out_specs=out_spec,
            scratch_shapes=[pltpu.VMEM((tm, tn), jnp.float32)],
        ),
        compiler_params=pltpu.CompilerParams(
            dimension_semantics=("parallel", "parallel", "arbitrary"),
            vmem_limit_bytes=vmem_limit,
        ),
        cost_estimate=cost,
    )(*args)

    if Np != n_out:
        out2d = out2d[:, :n_out]
    return out2d.reshape(*orig_shape[:-1], n_out)


# -----------------------------------------------------------------------------
# Module-equivalent wrapper (tp_size == 1)
# -----------------------------------------------------------------------------
class ColumnParallelLinearTPU:
    """Forward of vLLM's ColumnParallelLinear for tp_size == 1 (no quantization).

    Weight prep (transpose to (K, N) + lane-dense N padding) happens ONCE here,
    mirroring a static parameter re-layout at load time, so the steady-state
    forward never pays an extra HBM pass over the weights.
    """

    def __init__(self, weight, bias=None, *, skip_bias_add=False, gather_output=True):
        N, K = weight.shape                   # torch layout: (output_size, input_size)
        self.input_size = K
        self.output_size = N
        self.skip_bias_add = skip_bias_add
        self.gather_output = gather_output    # tp_size == 1 -> all-gather is identity
        self.bias = bias

        n_pad = max(_round_up(N, 128), 128)   # lane-dense output stores
        w_kn = jnp.transpose(weight)          # (K, N), one-time re-layout
        if n_pad != N:
            w_kn = jnp.pad(w_kn, ((0, 0), (0, n_pad - N)))
        self._w_kn = w_kn

        if bias is not None and not skip_bias_add:
            b = bias if n_pad == N else jnp.pad(bias, (0, n_pad - N))
            self._b_row = b.reshape(1, n_pad)
        else:
            self._b_row = None                # no dummy-bias DMA

    def __call__(self, x):
        output = _cpl_matmul(x, self._w_kn, self._b_row, self.output_size)
        output_bias = self.bias if self.skip_bias_add else None
        return output, output_bias


def column_parallel_linear(x, weight, bias=None, *, skip_bias_add=False):
    """Functional convenience form (re-does the one-time weight prep per call)."""
    return ColumnParallelLinearTPU(weight, bias, skip_bias_add=skip_bias_add)(x)


# -----------------------------------------------------------------------------
# Self-test
# -----------------------------------------------------------------------------
if __name__ == "__main__":
    # Module config: input_size=32, output_size=64, bias=True, gather_output=True,
    # tp_size=1 -> output_size_per_partition = 64.
    input_size = 32
    output_size = 64
    batch, seq = 2, 8

    key = jax.random.PRNGKey(0)
    kx, kw, kb = jax.random.split(key, 3)

    x = jax.random.normal(kx, (batch, seq, input_size), dtype=jnp.float32)
    # weight matches torch.nn.Parameter(output_size_per_partition, input_size)
    weight = jax.random.normal(kw, (output_size, input_size), dtype=jnp.float32) * 0.02
    bias = jax.random.normal(kb, (output_size,), dtype=jnp.float32) * 0.01

    ref_nobias = x @ weight.T

    # Standard path: bias fused in the kernel epilogue.
    layer = ColumnParallelLinearTPU(weight, bias)
    out, out_bias = layer(x)
    out = jax.block_until_ready(out)
    assert out.shape == (batch, seq, output_size)
    assert out_bias is None
    assert jnp.allclose(out, ref_nobias + bias, atol=1e-4, rtol=1e-4)

    # skip_bias_add: bias NOT added, returned instead.
    layer_skip = ColumnParallelLinearTPU(weight, bias, skip_bias_add=True)
    out2, out_bias2 = layer_skip(x)
    out2 = jax.block_until_ready(out2)
    assert jnp.allclose(out2, ref_nobias, atol=1e-4, rtol=1e-4)
    assert out_bias2 is not None and out_bias2.shape == (output_size,)

    # bias=False in the module: no bias operand at all.
    layer_nb = ColumnParallelLinearTPU(weight, None)
    out3, out_bias3 = layer_nb(x)
    out3 = jax.block_until_ready(out3)
    assert jnp.allclose(out3, ref_nobias, atol=1e-4, rtol=1e-4)
    assert out_bias3 is None

    # Functional wrapper smoke test.
    out4, _ = column_parallel_linear(x, weight, bias)
    out4 = jax.block_until_ready(out4)
    assert jnp.allclose(out4, ref_nobias + bias, atol=1e-4, rtol=1e-4)

    print("KERNEL_OK")
</pallas_src>

<mosaic_0001>
module attributes {stable_mosaic.version = 11 : i64} {
  func.func @_matmul_bias_kernel(%arg0: i32, %arg1: i32, %arg2: i32, %arg3: memref<16x32xf32, #tpu.memory_space<vmem>>, %arg4: memref<32x128xf32, #tpu.memory_space<vmem>>, %arg5: memref<1x128xf32, #tpu.memory_space<vmem>>, %arg6: memref<16x128xf32, #tpu.memory_space<vmem>>, %arg7: memref<16x128xf32, #tpu.memory_space<vmem>>) attributes {dimension_semantics = [#tpu.dimension_semantics<parallel>, #tpu.dimension_semantics<parallel>, #tpu.dimension_semantics<arbitrary>], iteration_bounds = array<i64: 1, 1, 1>, scalar_prefetch = 0 : i64, scratch_operands = 1 : i64, tpu.core_type = #tpu.core_type<tc>, window_params = [{transform_indices = @transform_0, window_bounds = array<i64: 16, 32>}, {transform_indices = @transform_1, window_bounds = array<i64: 32, 128>}, {transform_indices = @transform_2, window_bounds = array<i64: 1, 128>}, {transform_indices = @transform_3, window_bounds = array<i64: 16, 128>}]} {
    %c0 = arith.constant 0 : index
    %c0_0 = arith.constant 0 : index
    %0 = vector.load %arg3[%c0, %c0_0] : memref<16x32xf32, #tpu.memory_space<vmem>>, vector<16x32xf32>
    %c0_1 = arith.constant 0 : index
    %c0_2 = arith.constant 0 : index
    %1 = vector.load %arg4[%c0_1, %c0_2] : memref<32x128xf32, #tpu.memory_space<vmem>>, vector<32x128xf32>
    %cst = arith.constant dense<0.000000e+00> : vector<16x128xf32>
    %2 = tpu.matmul %0, %1, %cst {dimension_numbers = #tpu.dot_dimension_numbers<[1], [0], [0], [1], [0, 0, 1, 1], [], []>} : vector<16x32xf32>, vector<32x128xf32>, vector<16x128xf32> -> vector<16x128xf32>
    %c0_i32 = arith.constant 0 : i32
    %3 = arith.cmpi eq, %arg2, %c0_i32 : i32
    %4 = arith.extui %3 : i1 to i32
    %c0_i32_3 = arith.constant 0 : i32
    %5 = arith.cmpi ne, %4, %c0_i32_3 : i32
    scf.if %5 {
      %c0_8 = arith.constant 0 : index
      %c0_9 = arith.constant 0 : index
      %12 = vector.load %arg7[%c0_8, %c0_9] : memref<16x128xf32, #tpu.memory_space<vmem>>, vector<16x128xf32>
      tpu.vector_store %arg7[%c0_8, %c0_9], %2 {strides = array<i32>} : memref<16x128xf32, #tpu.memory_space<vmem>>, vector<16x128xf32>,
    } else {
    }
    %c0_i32_4 = arith.constant 0 : i32
    %6 = arith.cmpi sgt, %arg2, %c0_i32_4 : i32
    %7 = arith.extui %6 : i1 to i32
    %c0_i32_5 = arith.constant 0 : i32
    %8 = arith.cmpi ne, %7, %c0_i32_5 : i32
    scf.if %8 {
      %c0_8 = arith.constant 0 : index
      %c0_9 = arith.constant 0 : index
      %12 = vector.load %arg7[%c0_8, %c0_9] : memref<16x128xf32, #tpu.memory_space<vmem>>, vector<16x128xf32>
      %13 = arith.addf %12, %2 : vector<16x128xf32>
      %c0_10 = arith.constant 0 : index
      %c0_11 = arith.constant 0 : index
      %14 = vector.load %arg7[%c0_10, %c0_11] : memref<16x128xf32, #tpu.memory_space<vmem>>, vector<16x128xf32>
      tpu.vector_store %arg7[%c0_10, %c0_11], %13 {strides = array<i32>} : memref<16x128xf32, #tpu.memory_space<vmem>>, vector<16x128xf32>,
    } else {
    }
    %c0_i32_6 = arith.constant 0 : i32
    %9 = arith.cmpi eq, %arg2, %c0_i32_6 : i32
    %10 = arith.extui %9 : i1 to i32
    %c0_i32_7 = arith.constant 0 : i32
    %11 = arith.cmpi ne, %10, %c0_i32_7 : i32
    scf.if %11 {
      %c0_8 = arith.constant 0 : index
      %c0_9 = arith.constant 0 : index
      %12 = vector.load %arg7[%c0_8, %c0_9] : memref<16x128xf32, #tpu.memory_space<vmem>>, vector<16x128xf32>
      %c0_10 = arith.constant 0 : index
      %c0_11 = arith.constant 0 : index
      %13 = vector.load %arg5[%c0_10, %c0_11] : memref<1x128xf32, #tpu.memory_space<vmem>>, vector<1x128xf32>
      %14 = vector.broadcast %13 : vector<1x128xf32> to vector<16x128xf32>
      %15 = arith.addf %12, %14 : vector<16x128xf32>
      %c0_12 = arith.constant 0 : index
      %c0_13 = arith.constant 0 : index
      %16 = vector.load %arg6[%c0_12, %c0_13] : memref<16x128xf32, #tpu.memory_space<vmem>>, vector<16x128xf32>
      tpu.vector_store %arg6[%c0_12, %c0_13], %15 {strides = array<i32>} : memref<16x128xf32, #tpu.memory_space<vmem>>, vector<16x128xf32>,
    } else {
    }
    return
  }
  func.func @transform_0(%arg0: i32, %arg1: i32, %arg2: i32) -> (i32, i32) {
    %c0_i32 = arith.constant 0 : i32
    return %arg0, %arg2 : i32, i32
  }
  func.func @transform_1(%arg0: i32, %arg1: i32, %arg2: i32) -> (i32, i32) {
    %c0_i32 = arith.constant 0 : i32
    return %arg2, %arg1 : i32, i32
  }
  func.func @transform_2(%arg0: i32, %arg1: i32, %arg2: i32) -> (i32, i32) {
    %c0_i32 = arith.constant 0 : i32
    %c0_i32_0 = arith.constant 0 : i32
    return %c0_i32, %arg1 : i32, i32
  }
  func.func @transform_3(%arg0: i32, %arg1: i32, %arg2: i32) -> (i32, i32) {
    %c0_i32 = arith.constant 0 : i32
    return %arg0, %arg1 : i32, i32
  }
}

</mosaic_0001>

<bundles_post_ra>
// kernel: tpu_custom_call.1
= control target key start
LH: loop header
LB: loop body
LE: loop exit
PB: predicated region body
PF: predicated region fallthrough
CT: control target
= control target key end

     0   :  { %8 = vsyncpa [#allocation4], 0  ;;  %s320_s0 = inlined_call_operand.hbm [shape: f32[16,32], index: 0, kind: input, shape index: {}]   ;;  %s321_s1 = inlined_call_operand.hbm [shape: f32[32,128], index: 1, kind: input, shape index: {}]   ;;  %s322_s2 = inlined_call_operand.vmem [shape: f32[1,128], index: 2, kind: input, shape index: {}]   ;;  %s323_s3 = inlined_call_operand.hbm [shape: f32[16,128], index: 3, kind: output, shape index: {}]  }
   0x1   :  { %9 = vsyncpa [#allocation7], 0 }
   0x2   :  { %10 = vsyncpa [#allocation5], 0  ;;  %s272_s12 = smov [#allocation3]  }
   0x3   :  { %s16_s13 = sshll.u32 %s272_s12, 4  ;;  %s17_s13 = int_to_ptr.vmem [resolvable:$true] %s16_s13 }
   0x4   :  { %s214_s14 = scalar_lea.vmem %s17_s13, 256  ;;  %p219_p1 = scmp.lt.s32.totalorder %s17_s13, %s17_s13 }
   0x5   :  { %p215_p0 = scmp.ne.s32.totalorder %s17_s13, %s214_s14  ;;  %p220_p2 = scmp.lt.s32.totalorder %s214_s14, %s214_s14 }
   0x7   :  { %p221_p3 = por %p220_p2, %p219_p1 }
   0x9   :  { %p222_p4 = pnand %p221_p3, %p215_p0 }
   0xb   :  { %225 = shalt.err (!%p222_p4)
}
   0xc   :  { %s273_s15 = smov 128   ;;  %s274_s16 = smov 8  }
   0xd   :  { %22 = dma.hbm_to_vmem [thread:$0]  %s320_s0, 256, %s17_s13, [#allocation4], %s273_s15, %s273_s15, %s274_s16  }
   0xe   :  { %s275_s19 = smov [#allocation6]  }
   0xf   :  { %s28_s20 = sshll.u32 %s275_s19, 4  ;;  %s29_s20 = int_to_ptr.vmem [resolvable:$true] %s28_s20 }
  0x10   :  { %s234_s21 = scalar_lea.vmem %s29_s20, 512  ;;  %p239_p6 = scmp.lt.s32.totalorder %s29_s20, %s29_s20 }
  0x11   :  { %p235_p5 = scmp.ne.s32.totalorder %s29_s20, %s234_s21  ;;  %p240_p7 = scmp.lt.s32.totalorder %s234_s21, %s234_s21 }
  0x13   :  { %p241_p8 = por %p240_p7, %p239_p6 }
  0x15   :  { %p242_p9 = pnand %p241_p8, %p235_p5 }
  0x17   :  { %245 = shalt.err (!%p242_p9)
}
  0x18   :  { %34 = dma.hbm_to_vmem [thread:$0]  %s321_s1, 512, %s29_s20, [#allocation7], %s273_s15, %s273_s15, %s274_s16  }
  0x19   :  { %266 = dma.done.wait [#allocation4], 256  }
  0x1a   :  { %267 = vsyncadd [#allocation4], 4294967040 }
  0x1b   :  { %268 = dma.done.wait [#allocation7], 512  }
  0x1c   :  { %269 = vsyncadd [#allocation7], 4294966784  ;;  %vm49_vm0 = vcmask 261120   ;;  %v48_v0 = vld [vmem:[#allocation6 + $0x18] sm:$0xff]  ;;  %v47_v1 = vld [vmem:[#allocation6 + $0x10] sm:$0xff]  ;;  %s276_s24 = smov [#allocation8]  }
  0x1d   :  { %190 = vmatprep.subr.mxu0 %v48_v0  ;;  %v43_v2 = vld [vmem:[#allocation3] sm:$0xff]  ;;  %v46_v3 = vld [vmem:[#allocation6 + $0x8] sm:$0xff]  ;;  %v45_v4 = vld [vmem:[#allocation6] sm:$0xff]  ;;  %s168_s25 = sshll.u32 %s276_s24, 4  ;;  %s169_s25 = int_to_ptr.vmem [resolvable:$true] %s168_s25 }
  0x1e   :  { %191 = vmatpush3.msra.mxu0 %v48_v0  ;;  %198 = vmatprep.mubr.msk.f32.mxu0 %vm49_vm0, %v43_v2  ;;  %v44_v5 = vld [vmem:[#allocation3 + $0x8] sm:$0xff]  ;;  %v183_v6 = vld [vmem:[%s322_s2] ss:$0 sm:$0xff]  ;;  %s246_s26 = scalar_lea.vmem %s169_s25, 256  ;;  %p251_p11 = scmp.lt.s32.totalorder %s169_s25, %s169_s25 }
  0x1f   :  { %192 = vmatprep.subr.mxu0 %v47_v1  ;;  %p247_p10 = scmp.ne.s32.totalorder %s169_s25, %s246_s26  ;;  %p252_p12 = scmp.lt.s32.totalorder %s246_s26, %s246_s26 }
  0x20   :  { %193 = vmatpush3.msra.mxu0 %v47_v1 }
  0x21   :  { %194 = vmatprep.subr.mxu0 %v46_v3  ;;  %p253_p13 = por %p252_p12, %p251_p11 }
  0x22   :  { %195 = vmatpush3.msra.mxu0 %v46_v3 }
  0x23   :  { %196 = vmatprep.subr.mxu0 %v45_v4  ;;  %p254_p0 = pnand %p253_p13, %p247_p10 }
  0x24   :  { %197 = vmatpush3.msra.mxu0 %v45_v4 }
  0x25   :  { %199 = vmatmul.mubr.msk.f32.vlgmr.msra.gmra.mxu0 %vm49_vm0, %v44_v5 }
  0xe5   :  { %v200_v7 = vpop.f32.mrf.mxu0 }
  0xe6   :  { %v160_v8 = vadd.f32 %v200_v7, %v183_v6 }
  0xe7   :  { %v122_v9 = vpop.f32.mrf.mxu0 }
  0xe8   :  { %162 = vst [vmem:[#allocation8 + $0x8] sm:$0xff] %v160_v8  ;;  %v159_v10 = vadd.f32 %v183_v6, %v122_v9 }
  0xea   :  { %161 = vst [vmem:[#allocation8] sm:$0xff] %v159_v10 }
  0xeb   :  { %257 = shalt.err (!%p254_p0)
}
  0xec   :  { %174 = dma.vmem_to_hbm [thread:$0]  %s169_s25, 256, %s323_s3, [#allocation5], %s273_s15, %s273_s15, %s274_s16  }
  0xed   :  { %270 = dma.done.wait [#allocation5], 256  }
  0xee   :  { %271 = vsyncadd [#allocation5], 4294967040 }
  0xef   :  { %178 = vsyncpa [#allocation4], 1 }
  0xf0   :  { %179 = vsyncpa [#allocation7], 1 }
  0xf1   :  { %180 = vsyncpa [#allocation5], 1 }

</bundles_post_ra>
